<compile_context>
chip_gen: v5e
topology: v5e:2x2
jax: 0.10.0
libtpu: 0.0.40
codegen_flags: <defaults>
</compile_context>

<pallas_src>
import jax
import jax.numpy as jnp
from jax.experimental import pallas as pl
from jax.experimental.pallas import tpu as pltpu

_LANE = 128


def _sqrt_kernel(scale_ref, x_ref, o_ref):
    # scale_ref: (1,) f32 scalar-prefetch operand in SMEM (= a * sqrt(|b|)).
    # x_ref / o_ref: (tile_rows, 128) VMEM tiles in the input dtype.
    # Partial last block: OOB input lanes may hold garbage, but those lanes are
    # masked on output writeback, so any inf/NaN they produce is discarded.
    x = x_ref[...].astype(jnp.float32)
    o_ref[...] = (scale_ref[0] * jnp.sqrt(jnp.abs(x))).astype(o_ref.dtype)


def sqrt_model(x, a, b, *, tile_bytes=4 << 20):
    """Elementwise a * sqrt(|b * x|) via a lane-dense (rows, 128) Pallas kernel."""
    orig_shape = x.shape
    dtype = x.dtype
    n = x.size

    itemsize = jnp.dtype(dtype).itemsize
    sub = {4: 8, 2: 16, 1: 32}.get(itemsize, 8)   # sublane granule per dtype

    # Flatten to a lane-dense slab. Padding happens only when n % 128 != 0
    # (rare; < 128 padded elements) — never up to a tile multiple.
    rem = n % _LANE
    x_flat = x.reshape(-1)
    if rem:
        x_flat = jnp.pad(x_flat, (0, _LANE - rem))
    rows = x_flat.size // _LANE
    x2d = x_flat.reshape(rows, _LANE)

    # Tile rows: ~tile_bytes per tile, a multiple of `sub`, >= sub, no larger
    # than the (sub-rounded) row count. Pallas handles the partial last block,
    # so `rows` need not divide evenly by the tile.
    budget_rows = max(sub, tile_bytes // (_LANE * itemsize))
    tr = min(budget_rows, pl.cdiv(rows, sub) * sub)
    tr = max(sub, (tr // sub) * sub)
    # Give v7x's two TensorCores at least two grid steps to shard.
    if pl.cdiv(rows, tr) < 2 and tr > sub:
        tr = max(sub, pl.cdiv(pl.cdiv(rows, 2), sub) * sub)

    grid = (pl.cdiv(rows, tr),)

    # Fold both scalar parameters into one multiplier:
    #   a * sqrt(|b * x|) == (a * sqrt(|b|)) * sqrt(|x|)
    scale = (jnp.asarray(a, jnp.float32)
             * jnp.sqrt(jnp.abs(jnp.asarray(b, jnp.float32)))).reshape(1)

    out = pl.pallas_call(
        _sqrt_kernel,
        out_shape=jax.ShapeDtypeStruct((rows, _LANE), dtype),
        grid_spec=pltpu.PrefetchScalarGridSpec(
            num_scalar_prefetch=1,
            grid=grid,
            in_specs=[pl.BlockSpec((tr, _LANE), lambda i, s: (i, 0))],
            out_specs=pl.BlockSpec((tr, _LANE), lambda i, s: (i, 0)),
        ),
        compiler_params=pltpu.CompilerParams(
            dimension_semantics=("parallel",),
            vmem_limit_bytes=48 << 20,
        ),
        cost_estimate=pl.CostEstimate(
            flops=2 * n, transcendentals=n, bytes_accessed=2 * n * itemsize),
    )(scale, x2d)

    if rem:
        return out.reshape(-1)[:n].reshape(orig_shape)
    return out.reshape(orig_shape)


if __name__ == "__main__":
    # Parameters match nn.Parameter(torch.tensor(1.0)) for both a and b.
    a = jnp.float32(1.0)
    b = jnp.float32(1.0)

    key = jax.random.PRNGKey(0)
    x = jax.random.normal(key, (2, 4, 16, 16), dtype=jnp.float32)

    y = sqrt_model(x, a, b)
    jax.block_until_ready(y)

    # Correctness check against the pure-JAX reference of the PyTorch forward.
    y_ref = a * jnp.sqrt(jnp.abs(b * x))
    assert y.shape == x.shape and y.dtype == x.dtype
    assert jnp.allclose(y, y_ref, atol=1e-6, rtol=1e-6)

    print("KERNEL_OK")
</pallas_src>

<mosaic_0001>
module attributes {stable_mosaic.version = 11 : i64} {
  func.func @_sqrt_kernel(%arg0: i32, %arg1: memref<1xf32, #tpu.memory_space<smem>>, %arg2: memref<8x128xf32, #tpu.memory_space<vmem>>, %arg3: memref<8x128xf32, #tpu.memory_space<vmem>>) attributes {dimension_semantics = [#tpu.dimension_semantics<parallel>], iteration_bounds = array<i64: 2>, scalar_prefetch = 1 : i64, scratch_operands = 0 : i64, tpu.core_type = #tpu.core_type<tc>, window_params = [{transform_indices = @transform_0, window_bounds = array<i64: 8, 128>}, {transform_indices = @transform_1, window_bounds = array<i64: 8, 128>}]} {
    %c0 = arith.constant 0 : index
    %c0_0 = arith.constant 0 : index
    %0 = vector.load %arg2[%c0, %c0_0] : memref<8x128xf32, #tpu.memory_space<vmem>>, vector<8x128xf32>
    %c0_1 = arith.constant 0 : index
    %1 = memref.load %arg1[%c0_1] : memref<1xf32, #tpu.memory_space<smem>>
    %2 = math.absf %0 : vector<8x128xf32>
    %3 = math.sqrt %2 : vector<8x128xf32>
    %4 = vector.broadcast %1 : f32 to vector<8x128xf32>
    %5 = arith.mulf %4, %3 : vector<8x128xf32>
    %c0_2 = arith.constant 0 : index
    %c0_3 = arith.constant 0 : index
    %6 = vector.load %arg3[%c0_2, %c0_3] : memref<8x128xf32, #tpu.memory_space<vmem>>, vector<8x128xf32>
    tpu.vector_store %arg3[%c0_2, %c0_3], %5 {strides = array<i32>} : memref<8x128xf32, #tpu.memory_space<vmem>>, vector<8x128xf32>,
    return
  }
  func.func @transform_0(%arg0: i32, %arg1: memref<1xf32, #tpu.memory_space<smem>>) -> (i32, i32) {
    %c0_i32 = arith.constant 0 : i32
    %c0_i32_0 = arith.constant 0 : i32
    return %arg0, %c0_i32 : i32, i32
  }
  func.func @transform_1(%arg0: i32, %arg1: memref<1xf32, #tpu.memory_space<smem>>) -> (i32, i32) {
    %c0_i32 = arith.constant 0 : i32
    %c0_i32_0 = arith.constant 0 : i32
    return %arg0, %c0_i32 : i32, i32
  }
}

</mosaic_0001>

<bundles_post_ra>
// kernel: tpu_custom_call.1
= control target key start
LH: loop header
LB: loop body
LE: loop exit
PB: predicated region body
PF: predicated region fallthrough
CT: control target
= control target key end

     0   :  { %s543_s0 = inlined_call_operand.<no memory space> [shape: f32[1], index: 0, kind: input, shape index: {}]   ;;  %s544_s1 = inlined_call_operand.hbm [shape: f32[16,128], index: 1, kind: input, shape index: {}]   ;;  %s545_s2 = inlined_call_operand.hbm [shape: f32[16,128], index: 2, kind: output, shape index: {}]  }
   0x1   :  { %7 = sst [smem:[#allocation3]] %s543_s0 }
   0x2   :  { %8 = vsyncpa [#allocation5], 0 }
   0x3   :  { %10 = vsyncpa [#allocation5 + $0x1], 0 }
   0x4   :  { %11 = vsyncpa [#allocation6], 0 }
   0x5   :  { %13 = vsyncpa [#allocation6 + $0x1], 0  ;;  %s416_s11 = smov 0   ;;  %s418_s12 = smov 0  }
   0x6   :  { %s420_s13 = smov 0   ;;  %s422_s14 = smov 0  }
   0x7 LB: > { %s437_s0 = sadd.s32 4294967295, %s396_s14   ;;  %s240_s15 = sadd.s32 4294967294, %s396_s14   ;;  %s396_s14 = sphi %s422_s14, %s555_s14   ;;  %s392_s13 = sphi %s420_s13, %s554_s13   ;;  %s388_s12 = sphi %s418_s12, %s553_s12   ;;  %s384_s11 = sphi %s416_s11, %s552_s11  }
   0x8   : > { %s441_s16 = sadd.s32 1, %s396_s14   ;;  %s26_s17 = sadd.s32 1, %s392_s13 }
   0x9   : > { %s23_s18 = ssub.s32 %s396_s14, %s441_s16  ;;  %p33_p0 = scmp.ne.s32.totalorder %s392_s13, %s388_s12 }
   0xa   : > { %p24_p1 = scmp.eq.s32.totalorder %s23_s18, 0  ;;  %p34_p2 = scmp.eq.s32.totalorder %s396_s14, 0 }
   0xb   : > { %p39_p3 = scmp.ne.s32.totalorder %s388_s12, %s384_s11  ;;  %p40_p4 = scmp.eq.s32.totalorder %s437_s0, 0 }
   0xc   : > { %s453_s19 = scalar_select %p24_p1, %s392_s13, %s26_s17  }
   0xd   : > { %p455_p5 = por %p34_p2, %p33_p0  ;;  %p459_p6 = por %p40_p4, %p39_p3 }
   0xe   : > { %p63_p7 = scmp.eq.s32.totalorder %s437_s0, 1  ;;  %p69_p8 = scmp.eq.s32.totalorder %s240_s15, 1 }
   0xf   : > { %p264_p10 = scmp.lt.s32.totalorder %s396_s14, 2  ;;  %s89_s24 = sand.u32 1, %s392_s13  }
  0x10   : > { %p466_p11 = por %p63_p7, %p33_p0  ;;  %p470_p12 = por %p69_p8, %p39_p3 }
  0x11   : > { %s244_s25 = sshll.u32 %s396_s14, 3  ;;  %s243_s26 = sshll.u32 %s89_s24, 3 }
  0x12   : > { %s97_s29 = scalar_lea.hbm %s544_s1, %s244_s25  ;;  %s93_s3 = scalar_lea.vmem [#allocation4], %s243_s26 }
  0x13   : > { %s99_s30 = sshll.u32 %s97_s29, 4  ;;  %s101_s4 = sshll.u32 %s93_s3, 4  ;;  %s100_s30 = int_to_ptr.hbm [resolvable:$true] %s99_s30  ;;  %s102_s4 = int_to_ptr.vmem [resolvable:$true] %s101_s4 }
  0x14   : > { %p481_p13 = pnand %p264_p10, %p455_p5  ;;  %p245_p0 = scmp.ge.s32.totalorder %s396_s14, 1 }
  0x15   : > { %p106_p1 = scmp.lt.s32.totalorder %s396_s14, 3  ;;  %s90_s6 = scalar_lea.sflag [#allocation5], %s89_s24 }
  0x16   : > { %s300_s7 = sshra.s32 %s100_s30, 4  ;;  %p304_p3 = pneg %p481_p13  ;;  %s301_s7 = int_to_ptr.hbm [resolvable:$true] %s300_s7 }
  0x17   : > { %s302_s8 = scalar_lea.hbm %s301_s7, 8  ;;  %s307_s15 = scalar_lea.hbm %s544_s1, 16 }
  0x18   : > { %p303_p2 = scmp.ne.s32.totalorder %s301_s7, %s302_s8  ;;  %p308_p5 = scmp.lt.s32.totalorder %s301_s7, %s544_s1 }
  0x19   : > { %p309_p8 = scmp.lt.s32.totalorder %s307_s15, %s302_s8 }
  0x1a   : > { %p305_p4 = pnand %p304_p3, %p303_p2 }
  0x1b   : > { %p310_p10 = por %p309_p8, %p308_p5 }
  0x1c   : > { %p306_p7 = pneg %p305_p4 }
  0x1e   : > { %p311_p9 = pnand %p310_p10, %p306_p7 }
  0x20   : > { %314 = shalt.err (!%p311_p9)
}
  0x21   : > { %259 = dma.hbm_to_vmem [thread:$0]  (!%p481_p13), %s100_s30, 128, %s102_s4, %s90_s6  }
  0x22   : > { %p107_p2 = pnand %p245_p0, %p106_p1 }
  0x23   : > { %s502_s20 = sand.u32 (!%p107_p2), 1, %s388_s12  }
  0x24   : > { %110 = sbr.rel (%p107_p2) target bundleno = 71 (0x47), region = 24  ;;  %s246_s24 = sshll.u32 (!%p107_p2), %s502_s20, 3 }
  0x25   : > { %s113_s25 = scalar_lea.sflag (!%p107_p2), [#allocation5], %s502_s20  ;;  %s116_s26 = scalar_lea.vmem (!%p107_p2), [#allocation4], %s246_s24 }
  0x29   : > { %375 = dma.done.wait (%p459_p6), %s113_s25, 128  }
  0x2a   : > { %377 = vsyncadd (%p459_p6), %s113_s25, 4294967168  ;;  %v136_v0 = vld [vmem:[%s116_s26] sm:$0xff]  ;;  %s137_s27 = sld [smem:[#allocation3]]  ;;  %s249_s28 = sshll.u32 %s437_s0, 3 }
  0x2b   : > { %v138_v1 = vand.u32 2147483647, %v136_v0  ;;  %s165_s3 = scalar_lea.hbm %s545_s2, %s249_s28  ;;  %s135_s21 = scalar_lea.vmem [#allocation7], %s246_s24 }
  0x2c   : > { %s167_s4 = sshll.u32 %s135_s21, 4  ;;  %s169_s5 = sshll.u32 %s165_s3, 4  ;;  %s168_s4 = int_to_ptr.vmem [resolvable:$true] %s167_s4  ;;  %s170_s5 = int_to_ptr.hbm [resolvable:$true] %s169_s5 }
  0x2d   : > { %298 = vrsqrt.f32 %v138_v1  ;;  %vm146_vm0 = vcmp.eq.f32.partialorder %v138_v1, inf  ;;  %v149_v8 = vand.u32 2147483648, %v138_v1  ;;  %vm148_vm1 = vcmp.eq.f32.partialorder %v138_v1, 0.0  ;;  %s155_s0 = scalar_lea.sflag [#allocation6], %s502_s20  ;;  %s344_s6 = sshra.s32 %s170_s5, 4  ;;  %s345_s6 = int_to_ptr.hbm [resolvable:$true] %s344_s6 }
  0x2e   : > { %s346_s7 = scalar_lea.hbm %s345_s6, 8  ;;  %s350_s10 = scalar_lea.hbm %s545_s2, 16 }
  0x2f   : > { %p347_p6 = scmp.ne.s32.totalorder %s345_s6, %s346_s7  ;;  %p351_p0 = scmp.lt.s32.totalorder %s345_s6, %s545_s2 }
  0x30   : > { %v151_v10 = vstv %s137_s27  ;;  %p352_p1 = scmp.lt.s32.totalorder %s350_s10, %s346_s7 }
  0x31   : > { %p348_p9 = pnand %p347_p6, %p466_p11 }
  0x32   : > { %p353_p3 = por %p352_p1, %p351_p0 }
  0x33   : > { %v299_v2 = vpop.eup %298  ;;  %p349_p13 = pneg %p348_p9 }
  0x34   : > { %v140_v3 = vmul.f32 %v299_v2, %v138_v1 }
  0x35   : > { %p354_p4 = pnand %p353_p3, %p349_p13 }
  0x36   : > { %v141_v4 = vmul.f32 %v299_v2, %v140_v3 }
  0x38   : > { %v142_v5 = vmul.f32 0.5, %v141_v4 }
  0x3a   : > { %v143_v6 = vsub.f32 1.5, %v142_v5 }
  0x3c   : > { %v144_v7 = vmul.f32 %v299_v2, %v143_v6 }
  0x3e   : > { %v145_v9 = vmul.f32 %v144_v7, %v138_v1 }
  0x40   : > { %v147_v11 = vsel %vm146_vm0, %v138_v1, %v145_v9 }
  0x41   : > { %v150_v12 = vsel %vm148_vm1, %v149_v8, %v147_v11 }
  0x42   : > { %v152_v13 = vmul.f32 %v151_v10, %v150_v12 }
  0x44   : > { %153 = vst [vmem:[%s135_s21] sm:$0xff] %v152_v13 }
  0x45   : > { %357 = shalt.err (!%p354_p4)
}
  0x46   : > { %254 = dma.vmem_to_hbm [thread:$0]  (%p466_p11), %s168_s4, 128, %s170_s5, %s155_s0  }
  0x47 PF: > { %s181_s18 = sand.u32 1, %s384_s11   ;;  %p551_p7 = scmp.ge.s32.totalorder %s396_s14, 2 }
  0x48   : > { %s182_s20 = scalar_lea.sflag [#allocation6], %s181_s18 }
  0x49   : > { %p261_p5 = pnand %p551_p7, %p470_p12 }
  0x4b   : > { %p262_p8 = pneg %p261_p5 }
  0x4d   : > { %379 = dma.done.wait (%p262_p8), %s182_s20, 128  }
  0x4e   : > { %381 = vsyncadd (%p262_p8), %s182_s20, 4294967168  ;;  %p16_p10 = scmp.ge.s32.totalorder %s441_s16, 4   ;;  %s552_s11 = smov %s388_s12 }
  0x4f   : > { %s553_s12 = smov %s392_s13  ;;  %s554_s13 = smov %s453_s19 }
  0x50   : > { %s555_s14 = smov %s441_s16  ;;  %18 = sbr.rel (!%p16_p10) target bundleno = 7 (0x7), region = 69 }
  0x55   :  { %188 = vsyncpa [#allocation5], 1 }
  0x56   :  { %190 = vsyncpa [#allocation5 + $0x1], 1 }
  0x57   :  { %191 = vsyncpa [#allocation6], 1 }
  0x58   :  { %193 = vsyncpa [#allocation6 + $0x1], 1 }

</bundles_post_ra>
